<compile_context>
chip_gen: v5e
topology: v5e:2x2
jax: 0.10.0
libtpu: 0.0.40
codegen_flags: <defaults>
</compile_context>

<pallas_src>
import jax
import jax.numpy as jnp
from jax.experimental import pallas as pl
from jax.experimental.pallas import tpu as pltpu


# ---------------------------------------------------------------------------
# Kernel: one (TB, dim) row tile -> one (TB, 3*dim) output tile.
# ---------------------------------------------------------------------------
def _fused_qkv_kernel(x_ref, w_ref, b_ref, o_ref):
    acc = jnp.dot(x_ref[...], w_ref[...], preferred_element_type=jnp.float32)
    o_ref[...] = (acc + b_ref[...]).astype(o_ref.dtype)


def _pick_tile_rows(n_rows: int, max_tile: int) -> int:
    """Largest row tile that is a multiple of 8, divides n_rows when possible
    (no ragged block -> no wasted HBM traffic), and leaves >= 2 grid steps so
    both v7x TensorCores get work under dimension_semantics=("parallel",)."""
    max_tile = max(8, (max_tile // 8) * 8)
    if n_rows <= max_tile:
        half = n_rows // 2
        if n_rows % 16 == 0 and half >= 8:
            return half                      # grid = 2 (keeps both v7x TCs busy)
        return max(1, n_rows)                # tiny input: single full-extent block
    for tb in range(max_tile, 7, -8):
        if n_rows % tb == 0:
            return tb                        # exact divisor; grid >= 2 guaranteed
    return max_tile                          # no divisor: ragged last block (masked)


def lora_qkv_forward(x, w_qkv, b_qkv, a_q, b_q, a_v, b_v,
                     a_q2=None, b_q2=None, a_v2=None, b_v2=None,
                     *, max_tile_rows=1024):
    """Fused _LoRA_qkv.forward.

    x:      (B, H, W, dim)
    w_qkv:  (dim, 3*dim)  (transposed nn.Linear weight)
    b_qkv:  (3*dim,)
    a_*:    (dim, r), b_*: (r, dim)   (transposed, bias-free LoRA linears)
    Returns (B, H, W, 3*dim) in x.dtype. bf16 inputs halve HBM traffic; the
    MXU accumulates in f32 either way.
    """
    B, H, W, dim = x.shape
    assert w_qkv.shape == (dim, 3 * dim)

    # ---- Fold LoRA deltas into an effective qkv weight (exact for forward):
    # O(dim*r*dim) — negligible next to the token matmul — and it removes the
    # lane-sparse K=r MXU matmuls + sliced adds from the hot loop entirely.
    cdt = jnp.float32
    dq = jnp.dot(a_q.astype(cdt), b_q.astype(cdt))
    dv = jnp.dot(a_v.astype(cdt), b_v.astype(cdt))
    # Match PyTorch semantics: a second pair only applies when BOTH are given.
    if a_q2 is not None and b_q2 is not None:
        dq = dq + jnp.dot(a_q2.astype(cdt), b_q2.astype(cdt))
    if a_v2 is not None and b_v2 is not None:
        dv = dv + jnp.dot(a_v2.astype(cdt), b_v2.astype(cdt))
    w_eff = w_qkv.astype(cdt)
    w_eff = w_eff.at[:, :dim].add(dq)
    w_eff = w_eff.at[:, 2 * dim:].add(dv)
    w_eff = w_eff.astype(w_qkv.dtype)

    # ---- Flatten tokens. NO pad / slice round trip.
    n_rows = B * H * W
    xf = x.reshape(n_rows, dim)

    tb = _pick_tile_rows(n_rows, max_tile_rows)

    # ---- VMEM budget: resident weight+bias plus double-buffered x/out tiles.
    def _working_set(t):
        w_bytes = w_eff.size * w_eff.dtype.itemsize + 3 * dim * b_qkv.dtype.itemsize
        tile_bytes = (2 * t * dim * xf.dtype.itemsize
                      + 2 * t * 3 * dim * x.dtype.itemsize)
        return w_bytes + tile_bytes

    VMEM_BUDGET = 48 * 1024 * 1024          # leaves headroom inside v7x 64 MiB/TC
    while _working_set(tb) > VMEM_BUDGET and tb % 16 == 0 and tb > 64:
        tb //= 2                            # halving keeps divisibility of n_rows
    vmem_limit = int(min(128 * 1024 * 1024,
                         max(32 * 1024 * 1024, _working_set(tb) + (8 << 20))))

    grid = pl.cdiv(n_rows, tb)
    out = pl.pallas_call(
        _fused_qkv_kernel,
        out_shape=jax.ShapeDtypeStruct((n_rows, 3 * dim), x.dtype),
        grid=(grid,),
        in_specs=[
            pl.BlockSpec((tb, dim), lambda i: (i, 0)),        # x row tile
            pl.BlockSpec((dim, 3 * dim), lambda i: (0, 0)),   # W_eff (VMEM resident)
            pl.BlockSpec((1, 3 * dim), lambda i: (0, 0)),     # bias   (VMEM resident)
        ],
        out_specs=pl.BlockSpec((tb, 3 * dim), lambda i: (i, 0)),
        compiler_params=pltpu.CompilerParams(
            dimension_semantics=("parallel",),  # shard row tiles across v7x TCs
            vmem_limit_bytes=vmem_limit,
        ),
    )(xf, w_eff, b_qkv.reshape(1, 3 * dim))

    return out.reshape(B, H, W, 3 * dim)


def lora_qkv_reference(x, w_qkv, b_qkv, a_q, b_q, a_v, b_v,
                       a_q2=None, b_q2=None, a_v2=None, b_v2=None):
    """Pure-JAX reference matching _LoRA_qkv.forward."""
    dim = x.shape[-1]
    qkv = jnp.einsum("bhwd,de->bhwe", x, w_qkv) + b_qkv
    qkv = qkv.at[..., :dim].add((x @ a_q) @ b_q)
    qkv = qkv.at[..., -dim:].add((x @ a_v) @ b_v)
    if a_q2 is not None and b_q2 is not None:
        qkv = qkv.at[..., :dim].add((x @ a_q2) @ b_q2)
    if a_v2 is not None and b_v2 is not None:
        qkv = qkv.at[..., -dim:].add((x @ a_v2) @ b_v2)
    return qkv


if __name__ == "__main__":
    key = jax.random.PRNGKey(0)

    # Small shapes consistent with the module: SAM ViT block input
    # x: (B, H, W, dim) with dim=128, LoRA rank r=4, both LoRA pairs present.
    # n_rows = 512 -> tile_rows = 256, grid = 2 (both v7x TCs busy), no padding.
    B, H, W, dim, r = 2, 16, 16, 128, 4
    scale = 0.02

    keys = jax.random.split(key, 12)
    x = jax.random.normal(keys[0], (B, H, W, dim), jnp.float32)
    w_qkv = jax.random.normal(keys[1], (dim, 3 * dim), jnp.float32) * scale
    b_qkv = jax.random.normal(keys[2], (3 * dim,), jnp.float32) * scale
    a_q = jax.random.normal(keys[3], (dim, r), jnp.float32) * scale
    b_q = jax.random.normal(keys[4], (r, dim), jnp.float32) * scale
    a_v = jax.random.normal(keys[5], (dim, r), jnp.float32) * scale
    b_v = jax.random.normal(keys[6], (r, dim), jnp.float32) * scale
    # Second LoRA pair (exercises the `if self.linear_a_q2 ...` branches).
    a_q2 = jax.random.normal(keys[7], (dim, r), jnp.float32) * scale
    b_q2 = jax.random.normal(keys[8], (r, dim), jnp.float32) * scale
    a_v2 = jax.random.normal(keys[9], (dim, r), jnp.float32) * scale
    b_v2 = jax.random.normal(keys[10], (r, dim), jnp.float32) * scale

    out = lora_qkv_forward(x, w_qkv, b_qkv, a_q, b_q, a_v, b_v,
                           a_q2, b_q2, a_v2, b_v2)
    out = jax.block_until_ready(out)

    ref = lora_qkv_reference(x, w_qkv, b_qkv, a_q, b_q, a_v, b_v,
                             a_q2, b_q2, a_v2, b_v2)
    assert out.shape == (B, H, W, 3 * dim)
    max_err = float(jnp.max(jnp.abs(out - ref)))
    assert jnp.allclose(out, ref, atol=1e-3, rtol=1e-3), f"mismatch: {max_err}"

    print("KERNEL_OK")
</pallas_src>

<mosaic_0001>
module attributes {stable_mosaic.version = 11 : i64} {
  func.func @_fused_qkv_kernel(%arg0: i32, %arg1: memref<256x128xf32, #tpu.memory_space<vmem>>, %arg2: memref<128x384xf32, #tpu.memory_space<vmem>>, %arg3: memref<1x384xf32, #tpu.memory_space<vmem>>, %arg4: memref<256x384xf32, #tpu.memory_space<vmem>>) attributes {dimension_semantics = [#tpu.dimension_semantics<parallel>], iteration_bounds = array<i64: 2>, scalar_prefetch = 0 : i64, scratch_operands = 0 : i64, tpu.core_type = #tpu.core_type<tc>, window_params = [{transform_indices = @transform_0, window_bounds = array<i64: 256, 128>}, {pipeline_mode = #tpu.pipeline_mode<synchronous>, transform_indices = @transform_1, window_bounds = array<i64: 128, 384>}, {pipeline_mode = #tpu.pipeline_mode<synchronous>, transform_indices = @transform_2, window_bounds = array<i64: 1, 384>}, {transform_indices = @transform_3, window_bounds = array<i64: 256, 384>}]} {
    %c0 = arith.constant 0 : index
    %c0_0 = arith.constant 0 : index
    %0 = vector.load %arg1[%c0, %c0_0] : memref<256x128xf32, #tpu.memory_space<vmem>>, vector<256x128xf32>
    %c0_1 = arith.constant 0 : index
    %c0_2 = arith.constant 0 : index
    %1 = vector.load %arg2[%c0_1, %c0_2] : memref<128x384xf32, #tpu.memory_space<vmem>>, vector<128x384xf32>
    %cst = arith.constant dense<0.000000e+00> : vector<256x384xf32>
    %2 = tpu.matmul %0, %1, %cst {dimension_numbers = #tpu.dot_dimension_numbers<[1], [0], [0], [1], [0, 0, 1, 1], [], []>} : vector<256x128xf32>, vector<128x384xf32>, vector<256x384xf32> -> vector<256x384xf32>
    %c0_3 = arith.constant 0 : index
    %c0_4 = arith.constant 0 : index
    %3 = vector.load %arg3[%c0_3, %c0_4] : memref<1x384xf32, #tpu.memory_space<vmem>>, vector<1x384xf32>
    %4 = vector.broadcast %3 : vector<1x384xf32> to vector<256x384xf32>
    %5 = arith.addf %2, %4 : vector<256x384xf32>
    %c0_5 = arith.constant 0 : index
    %c0_6 = arith.constant 0 : index
    %6 = vector.load %arg4[%c0_5, %c0_6] : memref<256x384xf32, #tpu.memory_space<vmem>>, vector<256x384xf32>
    tpu.vector_store %arg4[%c0_5, %c0_6], %5 {strides = array<i32>} : memref<256x384xf32, #tpu.memory_space<vmem>>, vector<256x384xf32>,
    return
  }
  func.func @transform_0(%arg0: i32) -> (i32, i32) {
    %c0_i32 = arith.constant 0 : i32
    %c0_i32_0 = arith.constant 0 : i32
    return %arg0, %c0_i32 : i32, i32
  }
  func.func @transform_1(%arg0: i32) -> (i32, i32) {
    %c0_i32 = arith.constant 0 : i32
    %c0_i32_0 = arith.constant 0 : i32
    %c0_i32_1 = arith.constant 0 : i32
    return %c0_i32, %c0_i32_0 : i32, i32
  }
  func.func @transform_2(%arg0: i32) -> (i32, i32) {
    %c0_i32 = arith.constant 0 : i32
    %c0_i32_0 = arith.constant 0 : i32
    %c0_i32_1 = arith.constant 0 : i32
    return %c0_i32, %c0_i32_0 : i32, i32
  }
  func.func @transform_3(%arg0: i32) -> (i32, i32) {
    %c0_i32 = arith.constant 0 : i32
    %c0_i32_0 = arith.constant 0 : i32
    return %arg0, %c0_i32 : i32, i32
  }
}

</mosaic_0001>

<bundles_post_ra>
// kernel: tpu_custom_call.1
= control target key start
LH: loop header
LB: loop body
LE: loop exit
PB: predicated region body
PF: predicated region fallthrough
CT: control target
= control target key end

     0   :  { %8 = vsyncpa [#allocation3], 0  ;;  %s1712_s0 = inlined_call_operand.hbm [shape: f32[512,128], index: 0, kind: input, shape index: {}]   ;;  %s1713_s1 = inlined_call_operand.hbm [shape: f32[128,384], index: 1, kind: input, shape index: {}]   ;;  %s1714_s2 = inlined_call_operand.hbm [shape: f32[1,384], index: 2, kind: input, shape index: {}]   ;;  %s1715_s3 = inlined_call_operand.hbm [shape: f32[512,384], index: 3, kind: output, shape index: {}]  }
   0x1   :  { %10 = vsyncpa [#allocation3 + $0x1], 0 }
   0x2   :  { %11 = vsyncpa [#allocation6], 0 }
   0x3   :  { %12 = vsyncpa [#allocation4], 0 }
   0x4   :  { %14 = vsyncpa [#allocation4 + $0x1], 0  ;;  %s1187_s12 = smov 0   ;;  %s1189_s13 = smov 0  }
   0x5   :  { %s1191_s14 = smov 0   ;;  %s1193_s15 = smov 0  }
   0x6 LB: > { %s1208_s16 = sadd.s32 4294967295, %s1157_s15   ;;  %s856_s17 = sadd.s32 4294967294, %s1157_s15   ;;  %s1157_s15 = sphi %s1193_s15, %s1725_s15   ;;  %s1153_s14 = sphi %s1191_s14, %s1724_s14   ;;  %s1149_s13 = sphi %s1189_s13, %s1723_s13   ;;  %s1145_s12 = sphi %s1187_s12, %s1722_s12  }
   0x7   : > { %p40_p0 = scmp.ne.s32.totalorder %s1149_s13, %s1145_s12  ;;  %p41_p1 = scmp.eq.s32.totalorder %s1208_s16, 0 }
   0x8   : > { %p106_p2 = scmp.eq.s32.totalorder %s1208_s16, 1  ;;  %p112_p3 = scmp.eq.s32.totalorder %s856_s17, 1 }
   0x9   : > { %p1217_p4 = por %p41_p1, %p40_p0  ;;  %p857_p5 = scmp.ge.s32.totalorder %s1157_s15, 1 }
   0xa   : > { %p1222_p6 = por %p112_p3, %p40_p0  ;;  %p119_p7 = scmp.lt.s32.totalorder %s1157_s15, 3 }
   0xb   : > { %s130_s22 = sshll.u32 %s1713_s1, 4  ;;  %s1159_s24 = smov [#allocation5]   ;;  %s131_s22 = int_to_ptr.hbm [resolvable:$true] %s130_s22 }
   0xc   : > { %p1230_p8 = pnand %p857_p5, %p119_p7  ;;  %s132_s25 = sshll.u32 %s1159_s24, 4  ;;  %s133_s25 = int_to_ptr.vmem [resolvable:$true] %s132_s25 }
   0xd   : > { %s145_s28 = sshll.u32 %s1714_s2, 4  ;;  %s1160_s29 = smov 384   ;;  %s146_s28 = int_to_ptr.hbm [resolvable:$true] %s145_s28 }
   0xe   : > { %p936_p9 = pneg %p1230_p8  ;;  %s1161_s30 = smov 24  }
   0xf   : > { %s1162_s4 = smov [#allocation7]   ;;  %s1243_s6 = sadd.s32 1, %s1157_s15  }
  0x10   : > { %p937_p10 = pnand %p936_p9, %p41_p1  ;;  %s147_s5 = sshll.u32 %s1162_s4, 4  ;;  %s148_s5 = int_to_ptr.vmem [resolvable:$true] %s147_s5 }
  0x11   : > { %s27_s7 = sadd.s32 1, %s1153_s14  ;;  %s24_s8 = ssub.s32 %s1157_s15, %s1243_s6 }
  0x12   : > { %939 = dma.hbm_to_vmem [thread:$0]  (!%p937_p10), %s131_s22, 6144, %s133_s25, [#allocation6], %s1160_s29, %s1160_s29, %s1161_s30  }
  0x13   : > { %942 = dma.hbm_to_vmem [thread:$0]  (!%p937_p10), %s146_s28, 48, %s148_s5, [#allocation6]  }
  0x14   : > { %p34_p12 = scmp.ne.s32.totalorder %s1153_s14, %s1149_s13  ;;  %p25_p13 = scmp.eq.s32.totalorder %s24_s8, 0 }
  0x15   : > { %p35_p0 = scmp.eq.s32.totalorder %s1157_s15, 0  ;;  %p953_p5 = scmp.lt.s32.totalorder %s1157_s15, 2 }
  0x16   : > { %p1253_p3 = por %p106_p2, %p34_p12  ;;  %s158_s11 = sand.u32 1, %s1153_s14  }
  0x17   : > { %s1259_s10 = scalar_select %p25_p13, %s1153_s14, %s27_s7  }
  0x18   : > { %p36_p7 = por %p35_p0, %p34_p12  ;;  %s861_s17 = sshll.u32 %s158_s11, 8 }
  0x19   : > { %s873_s20 = sshll.u32 %s1157_s15, 8  ;;  %s162_s25 = scalar_lea.vmem [#allocation2], %s861_s17 }
  0x1a   : > { %s167_s24 = scalar_lea.hbm %s1712_s0, %s873_s20  ;;  %s170_s26 = sshll.u32 %s162_s25, 4  ;;  %s171_s26 = int_to_ptr.vmem [resolvable:$true] %s170_s26 }
  0x1b   : > { %s168_s27 = sshll.u32 %s167_s24, 4  ;;  %p1266_p2 = pnand %p953_p5, %p36_p7  ;;  %s169_s27 = int_to_ptr.hbm [resolvable:$true] %s168_s27 }
  0x1c   : > { %s159_s29 = scalar_lea.sflag [#allocation3], %s158_s11  ;;  %s1057_s30 = sshra.s32 %s169_s27, 4  ;;  %s1058_s30 = int_to_ptr.hbm [resolvable:$true] %s1057_s30 }
  0x1d   : > { %s1059_s4 = scalar_lea.hbm %s1058_s30, 256  ;;  %p1061_p10 = pneg %p1266_p2 }
  0x1e   : > { %p1060_p9 = scmp.ne.s32.totalorder %s1058_s30, %s1059_s4  ;;  %s1064_s8 = scalar_lea.hbm %s1712_s0, 512 }
  0x1f   : > { %p1065_p0 = scmp.lt.s32.totalorder %s1058_s30, %s1712_s0  ;;  %p1066_p5 = scmp.lt.s32.totalorder %s1064_s8, %s1059_s4 }
  0x20   : > { %p1062_p12 = pnand %p1061_p10, %p1060_p9 }
  0x21   : > { %p1067_p7 = por %p1066_p5, %p1065_p0 }
  0x22   : > { %p1063_p13 = pneg %p1062_p12 }
  0x24   : > { %p1068_p11 = pnand %p1067_p7, %p1063_p13 }
  0x26   : > { %1071 = shalt.err (!%p1068_p11)
}
  0x27   : > { %s1163_s11 = smov 128   ;;  %s1164_s21 = smov 8  }
  0x28   : > { %946 = dma.hbm_to_vmem [thread:$0]  (!%p1266_p2), %s169_s27, 4096, %s171_s26, %s159_s29, %s1163_s11, %s1163_s11, %s1164_s21  }
  0x29   : > { %182 = sbr.rel (%p1230_p8) target bundleno = 404 (0x194), region = 32  ;;  %s1283_s22 = sand.u32 (!%p1230_p8), 1, %s1149_s13  }
  0x2a   : > { %s865_s24 = sshll.u32 (!%p1230_p8), %s1283_s22, 8  ;;  %s185_s25 = scalar_lea.sflag (!%p1230_p8), [#allocation3], %s1283_s22 }
  0x2b   : > { %s1287_s30 = scalar_lea.vmem (!%p1230_p8), [#allocation2], %s865_s24 }
  0x2e   : > { %1132 = dma.done.wait (%p1217_p4), %s185_s25, 4096  }
  0x2f   : > { %1134 = vsyncadd (%p1217_p4), %s185_s25, 4294963200 }
  0x30   : > { %1136 = dma.done.wait (%p41_p1), [#allocation6], 6192  }
  0x31   : > { %1138 = vsyncadd (%p41_p1), [#allocation6], 4294961104  ;;  %v301_v0 = vld [vmem:[#allocation5 + $0x168] sm:$0xff]  ;;  %v1297_v1 = vld [vmem:[#allocation5 + $0x178] sm:$0xff]  ;;  %s922_s18 = smul.u32 768, %s1283_s22  ;;  %s748_s5 = scalar_lea.sflag [#allocation4], %s1283_s22 }
  0x32   : > { %v298_v2 = vld [vmem:[#allocation5 + $0x150] sm:$0xff]  ;;  %874 = vmatpush.msra.mxu3 %v301_v0  ;;  %538 = vmatpush.msra.mxu2 %v1297_v1  ;;  %v1300_v3 = vld [vmem:[#allocation5 + $0x160] sm:$0xff]  ;;  %v295_v4 = vld [vmem:[#allocation5 + $0x138] sm:$0xff]  ;;  %s923_s26 = smul.u32 768, %s1208_s16  ;;  %s1107_s11 = scalar_lea.hbm %s1715_s3, 1536 }
  0x33   : > { %v1302_v5 = vld [vmem:[#allocation5 + $0x148] sm:$0xff]  ;;  %312 = vmatpush.msra.mxu0 %v301_v0  ;;  %v1304_v6 = vld [vmem:[#allocation5 + $0x170] sm:$0xff]  ;;  %v1307_v7 = vld [vmem:[#allocation5 + $0x158] sm:$0xff]  ;;  %s1472_s23 = scalar_lea.vmem [#allocation8], %s922_s18 }
  0x34   : > { %875 = vmatpush.msra.mxu3 %v298_v2  ;;  %539 = vmatpush.msra.mxu2 %v1300_v3  ;;  %v292_v8 = vld [vmem:[#allocation5 + $0x120] sm:$0xff]  ;;  %v1310_v9 = vld [vmem:[#allocation5 + $0x130] sm:$0xff]  ;;  %v289_v11 = vld [vmem:[#allocation5 + $0x108] sm:$0xff]  ;;  %s760_s29 = scalar_lea.hbm %s1715_s3, %s923_s26  ;;  %s761_s16 = sshll.u32 %s1472_s23, 4  ;;  %s762_s16 = int_to_ptr.vmem [resolvable:$true] %s761_s16 }
  0x35   : > { %425 = vmatpush.msra.mxu1 %v1304_v6  ;;  %313 = vmatpush.msra.mxu0 %v298_v2  ;;  %v1313_v10 = vld [vmem:[#allocation5 + $0x140] sm:$0xff]  ;;  %v1316_v12 = vld [vmem:[#allocation5 + $0x118] sm:$0xff]  ;;  %v1319_v13 = vld [vmem:[#allocation5 + $0x128] sm:$0xff]  ;;  %s763_s4 = sshll.u32 %s760_s29, 4  ;;  %s764_s4 = int_to_ptr.hbm [resolvable:$true] %s763_s4 }
  0x36   : > { %876 = vmatpush.msra.mxu3 %v295_v4  ;;  %540 = vmatpush.msra.mxu2 %v1302_v5  ;;  %v286_v14 = vld [vmem:[#allocation5 + $0xf0] sm:$0xff]  ;;  %v1322_v15 = vld [vmem:[#allocation5 + $0x100] sm:$0xff]  ;;  %v283_v17 = vld [vmem:[#allocation5 + $0xd8] sm:$0xff]  ;;  %s1101_s7 = sshra.s32 %s764_s4, 4  ;;  %s1102_s7 = int_to_ptr.hbm [resolvable:$true] %s1101_s7 }
  0x37   : > { %426 = vmatpush.msra.mxu1 %v1307_v7  ;;  %314 = vmatpush.msra.mxu0 %v295_v4  ;;  %v1325_v16 = vld [vmem:[#allocation5 + $0x110] sm:$0xff]  ;;  %v1328_v18 = vld [vmem:[#allocation5 + $0xe8] sm:$0xff]  ;;  %v1331_v19 = vld [vmem:[#allocation5 + $0xf8] sm:$0xff]  ;;  %s1103_s8 = scalar_lea.hbm %s1102_s7, 768  ;;  %p1108_p11 = scmp.lt.s32.totalorder %s1102_s7, %s1715_s3 }
  0x38   : > { %877 = vmatpush.msra.mxu3 %v292_v8  ;;  %541 = vmatpush.msra.mxu2 %v1310_v9  ;;  %v280_v20 = vld [vmem:[#allocation5 + $0xc0] sm:$0xff]  ;;  %v1334_v21 = vld [vmem:[#allocation5 + $0xd0] sm:$0xff]  ;;  %v277_v23 = vld [vmem:[#allocation5 + $0xa8] sm:$0xff]  ;;  %p1104_p1 = scmp.ne.s32.totalorder %s1102_s7, %s1103_s8  ;;  %p1109_p2 = scmp.lt.s32.totalorder %s1107_s11, %s1103_s8 }
  0x39   : > { %427 = vmatpush.msra.mxu1 %v1313_v10  ;;  %315 = vmatpush.msra.mxu0 %v292_v8  ;;  %v1337_v22 = vld [vmem:[#allocation5 + $0xe0] sm:$0xff]  ;;  %v1340_v24 = vld [vmem:[#allocation5 + $0xb8] sm:$0xff]  ;;  %v1343_v25 = vld [vmem:[#allocation5 + $0xc8] sm:$0xff] }
  0x3a   : > { %878 = vmatpush.msra.mxu3 %v289_v11  ;;  %542 = vmatpush.msra.mxu2 %v1316_v12  ;;  %v274_v26 = vld [vmem:[#allocation5 + $0x90] sm:$0xff]  ;;  %v1346_v27 = vld [vmem:[#allocation5 + $0xa0] sm:$0xff]  ;;  %v271_v29 = vld [vmem:[#allocation5 + $0x78] sm:$0xff]  ;;  %p1105_p4 = pnand %p1104_p1, %p1253_p3  ;;  %p1110_p9 = por %p1109_p2, %p1108_p11 }
  0x3b   : > { %428 = vmatpush.msra.mxu1 %v1319_v13  ;;  %316 = vmatpush.msra.mxu0 %v289_v11  ;;  %v1349_v28 = vld [vmem:[#allocation5 + $0xb0] sm:$0xff]  ;;  %v1352_v30 = vld [vmem:[#allocation5 + $0x88] sm:$0xff]  ;;  %v1355_v31 = vld [vmem:[#allocation5 + $0x98] sm:$0xff] }
  0x3c   : > { %879 = vmatpush.msra.mxu3 %v286_v14  ;;  %543 = vmatpush.msra.mxu2 %v1322_v15  ;;  %v268_v32 = vld [vmem:[#allocation5 + $0x60] sm:$0xff]  ;;  %v1358_v33 = vld [vmem:[#allocation5 + $0x70] sm:$0xff]  ;;  %v265_v35 = vld [vmem:[#allocation5 + $0x48] sm:$0xff]  ;;  %p1106_p8 = pneg %p1105_p4 }
  0x3d   : > { %429 = vmatpush.msra.mxu1 %v1325_v16  ;;  %317 = vmatpush.msra.mxu0 %v286_v14  ;;  %v1361_v34 = vld [vmem:[#allocation5 + $0x80] sm:$0xff]  ;;  %v1364_v36 = vld [vmem:[#allocation5 + $0x58] sm:$0xff]  ;;  %v269_v37 = vld [vmem:[#allocation5 + $0x68] sm:$0xff] }
  0x3e   : > { %880 = vmatpush.msra.mxu3 %v283_v17  ;;  %544 = vmatpush.msra.mxu2 %v1328_v18  ;;  %v262_v38 = vld [vmem:[#allocation5 + $0x30] sm:$0xff]  ;;  %v1368_v39 = vld [vmem:[#allocation5 + $0x40] sm:$0xff]  ;;  %v259_v41 = vld [vmem:[#allocation5 + $0x18] sm:$0xff]  ;;  %p1111_p10 = pnand %p1110_p9, %p1106_p8 }
  0x3f   : > { %430 = vmatpush.msra.mxu1 %v1331_v19  ;;  %318 = vmatpush.msra.mxu0 %v283_v17  ;;  %v266_v40 = vld [vmem:[#allocation5 + $0x50] sm:$0xff]  ;;  %v1371_v42 = vld [vmem:[#allocation5 + $0x28] sm:$0xff]  ;;  %v263_v43 = vld [vmem:[#allocation5 + $0x38] sm:$0xff] }
  0x40   : > { %881 = vmatpush.msra.mxu3 %v280_v20  ;;  %545 = vmatpush.msra.mxu2 %v1334_v21  ;;  %v256_v44 = vld [vmem:[#allocation5] sm:$0xff]  ;;  %v1374_v45 = vld [vmem:[#allocation5 + $0x10] sm:$0xff]  ;;  %v257_v49 = vld [vmem:[#allocation5 + $0x8] sm:$0xff] }
  0x41   : > { %431 = vmatpush.msra.mxu1 %v1337_v22  ;;  %319 = vmatpush.msra.mxu0 %v280_v20  ;;  %v1378_v46 = vld [vmem:[%s1287_s30 + $0xc0] sm:$0xff]  ;;  %v1386_v50 = vld [vmem:[%s1287_s30 + $0xc8] sm:$0xff]  ;;  %v1395_v52 = vld [vmem:[%s1287_s30 + $0xd0] sm:$0xff] }
  0x42   : > { %882 = vmatpush.msra.mxu3 %v277_v23  ;;  %546 = vmatpush.msra.mxu2 %v1340_v24  ;;  %v224_v47 = vld [vmem:[%s1287_s30] sm:$0xff]  ;;  %v225_v51 = vld [vmem:[%s1287_s30 + $0x8] sm:$0xff]  ;;  %v226_v53 = vld [vmem:[%s1287_s30 + $0x10] sm:$0xff] }
  0x43   : > { %432 = vmatpush.msra.mxu1 %v1343_v25  ;;  %320 = vmatpush.msra.mxu0 %v277_v23  ;;  %v260_v48 = vld [vmem:[#allocation5 + $0x20] sm:$0xff]  ;;  %v1404_v54 = vld [vmem:[%s1287_s30 + $0xd8] sm:$0xff]  ;;  %v1417_v58 = vld [vmem:[%s1287_s30 + $0xe8] sm:$0xff] }
  0x44   : > { %883 = vmatpush.msra.mxu3 %v274_v26  ;;  %547 = vmatpush.msra.mxu2 %v1346_v27  ;;  %v227_v55 = vld [vmem:[%s1287_s30 + $0x18] sm:$0xff]  ;;  %v1410_v56 = vld [vmem:[%s1287_s30 + $0xe0] sm:$0xff]  ;;  %v229_v59 = vld [vmem:[%s1287_s30 + $0x28] sm:$0xff] }
  0x45   : > { %433 = vmatpush.msra.mxu1 %v1349_v28  ;;  %321 = vmatpush.msra.mxu0 %v274_v26  ;;  %v228_v57 = vld [vmem:[%s1287_s30 + $0x20] sm:$0xff]  ;;  %v1426_v60 = vld [vmem:[%s1287_s30 + $0xf0] sm:$0xff]  ;;  %v1435_v62 = vld [vmem:[%s1287_s30 + $0xf8] sm:$0xff] }
  0x46   : > { %884 = vmatpush.msra.mxu3 %v271_v29  ;;  %548 = vmatpush.msra.mxu2 %v1352_v30  ;;  %v230_v61 = vld [vmem:[%s1287_s30 + $0x30] sm:$0xff]  ;;  %v231_v63 = vld [vmem:[%s1287_s30 + $0x38] sm:$0xff]  ;;  %v232_v0 = vld [vmem:[%s1287_s30 + $0x40] sm:$0xff] }
  0x47   : > { %434 = vmatpush.msra.mxu1 %v1355_v31  ;;  %322 = vmatpush.msra.mxu0 %v271_v29  ;;  %v234_v2 = vld [vmem:[%s1287_s30 + $0x50] sm:$0xff]  ;;  %v236_v4 = vld [vmem:[%s1287_s30 + $0x60] sm:$0xff] }
  0x48   : > { %885 = vmatpush.msra.mxu3 %v268_v32  ;;  %549 = vmatpush.msra.mxu2 %v1358_v33  ;;  %v304_v8 = vld [vmem:[#allocation7] sm:$0x7] }
  0x49   : > { %435 = vmatpush.msra.mxu1 %v1361_v34  ;;  %323 = vmatpush.msra.mxu0 %v268_v32  ;;  %v1465_v11 = vperm.slane %v304_v8, 1 }
  0x4a   : > { %886 = vmatpush.msra.mxu3 %v265_v35  ;;  %550 = vmatpush.msra.mxu2 %v1364_v36 }
  0x4b   : > { %436 = vmatpush.msra.mxu1 %v269_v37  ;;  %324 = vmatpush.msra.mxu0 %v265_v35 }
  0x4c   : > { %887 = vmatpush.msra.mxu3 %v262_v38  ;;  %551 = vmatpush.msra.mxu2 %v1368_v39 }
  0x4d   : > { %437 = vmatpush.msra.mxu1 %v266_v40  ;;  %325 = vmatpush.msra.mxu0 %v262_v38 }
  0x4e   : > { %888 = vmatpush.msra.mxu3 %v259_v41  ;;  %552 = vmatpush.msra.mxu2 %v1371_v42 }
  0x4f   : > { %438 = vmatpush.msra.mxu1 %v263_v43  ;;  %326 = vmatpush.msra.mxu0 %v259_v41 }
  0x50   : > { %889 = vmatpush.msra.mxu3 %v256_v44  ;;  %553 = vmatpush.msra.mxu2 %v1374_v45 }
  0x51   : > { %400 = vmatmul.f32.vlgmr.msra.gmra.mxu3 %v1378_v46  ;;  %554 = vmatmul.f32.vlgmr.msra.gmra.mxu2 %v224_v47 }
  0x52   : > { %890 = vmatpush.msrb.mxu3 %v1304_v6  ;;  %439 = vmatpush.msra.mxu1 %v260_v48  ;;  %v238_v6 = vld [vmem:[%s1287_s30 + $0x70] sm:$0xff] }
  0x53   : > { %327 = vmatpush.msra.mxu0 %v256_v44 }
  0x54   : > { %891 = vmatpush.msrb.mxu3 %v1307_v7  ;;  %440 = vmatpush.msra.mxu1 %v257_v49  ;;  %v239_v7 = vld [vmem:[%s1287_s30 + $0x78] sm:$0xff] }
  0x55   : > { %328 = vmatmul.f32.vlgmr.msra.gmra.mxu0 %v224_v47  ;;  %441 = vmatmul.f32.vlgmr.msra.gmra.mxu1 %v224_v47 }
  0x56   : > { %892 = vmatpush.msrb.mxu3 %v1313_v10  ;;  %v1463_v10 = vperm.slane %v304_v8, 0 }
  0x58   : > { %893 = vmatpush.msrb.mxu3 %v1319_v13 }
  0x59   : > { %403 = vmatmul.f32.gmra.mxu3 %v1386_v50  ;;  %557 = vmatmul.f32.gmra.mxu2 %v225_v51 }
  0x5a   : > { %894 = vmatpush.msrb.mxu3 %v1325_v16 }
  0x5c   : > { %895 = vmatpush.msrb.mxu3 %v1331_v19 }
  0x5d   : > { %331 = vmatmul.f32.gmra.mxu0 %v225_v51  ;;  %444 = vmatmul.f32.gmra.mxu1 %v225_v51 }
  0x5e   : > { %896 = vmatpush.msrb.mxu3 %v1337_v22 }
  0x60   : > { %897 = vmatpush.msrb.mxu3 %v1343_v25 }
  0x61   : > { %406 = vmatmul.f32.gmra.mxu3 %v1395_v52  ;;  %560 = vmatmul.f32.gmra.mxu2 %v226_v53 }
  0x62   : > { %898 = vmatpush.msrb.mxu3 %v1349_v28 }
  0x64   : > { %899 = vmatpush.msrb.mxu3 %v1355_v31 }
  0x65   : > { %334 = vmatmul.f32.gmra.mxu0 %v226_v53  ;;  %447 = vmatmul.f32.gmra.mxu1 %v226_v53 }
  0x66   : > { %900 = vmatpush.msrb.mxu3 %v1361_v34 }
  0x68   : > { %901 = vmatpush.msrb.mxu3 %v269_v37 }
  0x69   : > { %409 = vmatmul.f32.gmra.mxu3 %v1404_v54  ;;  %563 = vmatmul.f32.gmra.mxu2 %v227_v55 }
  0x6a   : > { %902 = vmatpush.msrb.mxu3 %v266_v40 }
  0x6c   : > { %903 = vmatpush.msrb.mxu3 %v263_v43 }
  0x6d   : > { %337 = vmatmul.f32.gmra.mxu0 %v227_v55  ;;  %450 = vmatmul.f32.gmra.mxu1 %v227_v55 }
  0x6e   : > { %904 = vmatpush.msrb.mxu3 %v260_v48  ;;  %v244_v48 = vld [vmem:[%s1287_s30 + $0xa0] sm:$0xff] }
  0x70   : > { %905 = vmatpush.msrb.mxu3 %v257_v49 }
  0x71   : > { %412 = vmatmul.f32.gmra.mxu3 %v1410_v56  ;;  %566 = vmatmul.f32.gmra.mxu2 %v228_v57 }
  0x72   : > { %906 = vmatpush.msra.mxu3 %v1297_v1  ;;  %v233_v1 = vld [vmem:[%s1287_s30 + $0x48] sm:$0xff] }
  0x74   : > { %907 = vmatpush.msra.mxu3 %v1300_v3  ;;  %v235_v3 = vld [vmem:[%s1287_s30 + $0x58] sm:$0xff] }
  0x75   : > { %340 = vmatmul.f32.gmra.mxu0 %v228_v57  ;;  %453 = vmatmul.f32.gmra.mxu1 %v228_v57 }
  0x76   : > { %908 = vmatpush.msra.mxu3 %v1302_v5  ;;  %v237_v5 = vld [vmem:[%s1287_s30 + $0x68] sm:$0xff] }
  0x78   : > { %909 = vmatpush.msra.mxu3 %v1310_v9  ;;  %v240_v9 = vld [vmem:[%s1287_s30 + $0x80] sm:$0xff] }
  0x79   : > { %415 = vmatmul.f32.gmra.mxu3 %v1417_v58  ;;  %569 = vmatmul.f32.gmra.mxu2 %v229_v59 }
  0x7a   : > { %910 = vmatpush.msra.mxu3 %v1316_v12  ;;  %v1468_v12 = vperm.slane %v304_v8, 2 }
  0x7c   : > { %911 = vmatpush.msra.mxu3 %v1322_v15 }
  0x7d   : > { %343 = vmatmul.f32.gmra.mxu0 %v229_v59  ;;  %456 = vmatmul.f32.gmra.mxu1 %v229_v59  ;;  %v245_v59 = vld [vmem:[%s1287_s30 + $0xa8] sm:$0xff] }
  0x7e   : > { %912 = vmatpush.msra.mxu3 %v1328_v18 }
  0x80   : > { %913 = vmatpush.msra.mxu3 %v1334_v21  ;;  %v241_v21 = vld [vmem:[%s1287_s30 + $0x88] sm:$0xff] }
  0x81   : > { %418 = vmatmul.f32.gmra.mxu3 %v1426_v60  ;;  %572 = vmatmul.f32.gmra.mxu2 %v230_v61 }
  0x82   : > { %914 = vmatpush.msra.mxu3 %v1340_v24 }
  0x84   : > { %915 = vmatpush.msra.mxu3 %v1346_v27 }
  0x85   : > { %346 = vmatmul.f32.gmra.mxu0 %v230_v61  ;;  %459 = vmatmul.f32.gmra.mxu1 %v230_v61 }
  0x86   : > { %916 = vmatpush.msra.mxu3 %v1352_v30  ;;  %v242_v30 = vld [vmem:[%s1287_s30 + $0x90] sm:$0xff] }
  0x88   : > { %917 = vmatpush.msra.mxu3 %v1358_v33 }
  0x89   : > { %421 = vmatmul.f32.gmra.mxu3 %v1435_v62  ;;  %575 = vmatmul.f32.gmra.mxu2 %v231_v63 }
  0x8a   : > { %918 = vmatpush.msra.mxu3 %v1364_v36 }
  0x8c   : > { %919 = vmatpush.msra.mxu3 %v1368_v39  ;;  %v243_v39 = vld [vmem:[%s1287_s30 + $0x98] sm:$0xff] }
  0x8d   : > { %349 = vmatmul.f32.gmra.mxu0 %v231_v63  ;;  %462 = vmatmul.f32.gmra.mxu1 %v231_v63 }
  0x8e   : > { %920 = vmatpush.msra.mxu3 %v1371_v42 }
  0x90   : > { %921 = vmatpush.msra.mxu3 %v1374_v45 }
  0x91   : > { %513 = vmatmul.f32.vlgmr.msrb.gmra.mxu3 %v1378_v46  ;;  %578 = vmatmul.f32.gmra.mxu2 %v232_v0 }
  0x95   : > { %352 = vmatmul.f32.gmra.mxu0 %v232_v0  ;;  %465 = vmatmul.f32.gmra.mxu1 %v232_v0 }
  0x99   : > { %516 = vmatmul.f32.gmra.mxu3 %v1386_v50  ;;  %581 = vmatmul.f32.gmra.mxu2 %v233_v1 }
  0x9d   : > { %355 = vmatmul.f32.gmra.mxu0 %v233_v1  ;;  %468 = vmatmul.f32.gmra.mxu1 %v233_v1 }
  0xa1   : > { %519 = vmatmul.f32.gmra.mxu3 %v1395_v52  ;;  %584 = vmatmul.f32.gmra.mxu2 %v234_v2 }
  0xa5   : > { %358 = vmatmul.f32.gmra.mxu0 %v234_v2  ;;  %471 = vmatmul.f32.gmra.mxu1 %v234_v2 }
  0xa9   : > { %522 = vmatmul.f32.gmra.mxu3 %v1404_v54  ;;  %587 = vmatmul.f32.gmra.mxu2 %v235_v3 }
  0xad   : > { %361 = vmatmul.f32.gmra.mxu0 %v235_v3  ;;  %474 = vmatmul.f32.gmra.mxu1 %v235_v3 }
  0xb1   : > { %525 = vmatmul.f32.gmra.mxu3 %v1410_v56  ;;  %590 = vmatmul.f32.gmra.mxu2 %v236_v4 }
  0xb5   : > { %364 = vmatmul.f32.gmra.mxu0 %v236_v4  ;;  %477 = vmatmul.f32.gmra.mxu1 %v236_v4 }
  0xb9   : > { %528 = vmatmul.f32.gmra.mxu3 %v1417_v58  ;;  %593 = vmatmul.f32.gmra.mxu2 %v237_v5 }
  0xbd   : > { %367 = vmatmul.f32.gmra.mxu0 %v237_v5  ;;  %480 = vmatmul.f32.gmra.mxu1 %v237_v5  ;;  %v246_v5 = vld [vmem:[%s1287_s30 + $0xb0] sm:$0xff] }
  0xc1   : > { %531 = vmatmul.f32.gmra.mxu3 %v1426_v60  ;;  %596 = vmatmul.f32.gmra.mxu2 %v238_v6 }
  0xc5   : > { %370 = vmatmul.f32.gmra.mxu0 %v238_v6  ;;  %483 = vmatmul.f32.gmra.mxu1 %v238_v6 }
  0xc9   : > { %534 = vmatmul.f32.gmra.mxu3 %v1435_v62  ;;  %599 = vmatmul.f32.gmra.mxu2 %v239_v7 }
  0xcd   : > { %373 = vmatmul.f32.gmra.mxu0 %v239_v7  ;;  %486 = vmatmul.f32.gmra.mxu1 %v239_v7 }
  0xd1   : > { %602 = vmatmul.f32.gmra.mxu2 %v240_v9  ;;  %626 = vmatmul.f32.vlgmr.msra.gmra.mxu3 %v1378_v46 }
  0xd2   : > { %v329_v13 = vpop.f32.mrf.mxu0  ;;  %v442_v14 = vpop.f32.mrf.mxu1 }
  0xd3   : > { %v330_v15 = vadd.f32 %v329_v13, %v1463_v10  ;;  %v443_v16 = vadd.f32 %v442_v14, %v1465_v11 }
  0xd4   : > { %v401_v17 = vpop.f32.mrf.mxu3  ;;  %v555_v18 = vpop.f32.mrf.mxu2 }
  0xd5   : > { %651 = vst [vmem:[%s1472_s23] sm:$0xff] %v330_v15  ;;  %v402_v19 = vadd.f32 %v401_v17, %v1463_v10  ;;  %v556_v20 = vadd.f32 %v555_v18, %v1468_v12  ;;  %376 = vmatmul.f32.gmra.mxu0 %v240_v9  ;;  %489 = vmatmul.f32.gmra.mxu1 %v240_v9 }
  0xd6   : > { %652 = vst [vmem:[%s1472_s23 + $0x8] sm:$0xff] %v443_v16  ;;  %v247_v16 = vld [vmem:[%s1287_s30 + $0xb8] sm:$0xff] }
  0xd7   : > { %723 = vst [vmem:[%s1472_s23 + $0x240] sm:$0xff] %v402_v19 }
  0xd8   : > { %653 = vst [vmem:[%s1472_s23 + $0x10] sm:$0xff] %v556_v20 }
  0xd9   : > { %605 = vmatmul.f32.gmra.mxu2 %v241_v21  ;;  %629 = vmatmul.f32.gmra.mxu3 %v1386_v50 }
  0xda   : > { %v332_v22 = vpop.f32.mrf.mxu0  ;;  %v445_v23 = vpop.f32.mrf.mxu1 }
  0xdb   : > { %v333_v24 = vadd.f32 %v332_v22, %v1463_v10  ;;  %v446_v25 = vadd.f32 %v445_v23, %v1465_v11 }
  0xdc   : > { %v404_v26 = vpop.f32.mrf.mxu3  ;;  %v558_v27 = vpop.f32.mrf.mxu2 }
  0xdd   : > { %654 = vst [vmem:[%s1472_s23 + $0x18] sm:$0xff] %v333_v24  ;;  %v405_v28 = vadd.f32 %v404_v26, %v1463_v10  ;;  %v559_v29 = vadd.f32 %v558_v27, %v1468_v12  ;;  %379 = vmatmul.f32.gmra.mxu0 %v241_v21  ;;  %492 = vmatmul.f32.gmra.mxu1 %v241_v21 }
  0xde   : > { %655 = vst [vmem:[%s1472_s23 + $0x20] sm:$0xff] %v446_v25 }
  0xdf   : > { %726 = vst [vmem:[%s1472_s23 + $0x258] sm:$0xff] %v405_v28 }
  0xe0   : > { %656 = vst [vmem:[%s1472_s23 + $0x28] sm:$0xff] %v559_v29 }
  0xe1   : > { %608 = vmatmul.f32.gmra.mxu2 %v242_v30  ;;  %632 = vmatmul.f32.gmra.mxu3 %v1395_v52 }
  0xe2   : > { %v335_v31 = vpop.f32.mrf.mxu0  ;;  %v448_v32 = vpop.f32.mrf.mxu1 }
  0xe3   : > { %v336_v33 = vadd.f32 %v335_v31, %v1463_v10  ;;  %v449_v34 = vadd.f32 %v448_v32, %v1465_v11 }
  0xe4   : > { %v407_v35 = vpop.f32.mrf.mxu3  ;;  %v561_v36 = vpop.f32.mrf.mxu2 }
  0xe5   : > { %657 = vst [vmem:[%s1472_s23 + $0x30] sm:$0xff] %v336_v33  ;;  %v408_v37 = vadd.f32 %v407_v35, %v1463_v10  ;;  %v562_v38 = vadd.f32 %v561_v36, %v1468_v12  ;;  %382 = vmatmul.f32.gmra.mxu0 %v242_v30  ;;  %495 = vmatmul.f32.gmra.mxu1 %v242_v30 }
  0xe6   : > { %658 = vst [vmem:[%s1472_s23 + $0x38] sm:$0xff] %v449_v34 }
  0xe7   : > { %729 = vst [vmem:[%s1472_s23 + $0x270] sm:$0xff] %v408_v37 }
  0xe8   : > { %659 = vst [vmem:[%s1472_s23 + $0x40] sm:$0xff] %v562_v38 }
  0xe9   : > { %611 = vmatmul.f32.gmra.mxu2 %v243_v39  ;;  %635 = vmatmul.f32.gmra.mxu3 %v1404_v54 }
  0xea   : > { %v338_v40 = vpop.f32.mrf.mxu0  ;;  %v451_v41 = vpop.f32.mrf.mxu1 }
  0xeb   : > { %v339_v42 = vadd.f32 %v338_v40, %v1463_v10  ;;  %v452_v43 = vadd.f32 %v451_v41, %v1465_v11 }
  0xec   : > { %v410_v44 = vpop.f32.mrf.mxu3  ;;  %v564_v45 = vpop.f32.mrf.mxu2 }
  0xed   : > { %660 = vst [vmem:[%s1472_s23 + $0x48] sm:$0xff] %v339_v42  ;;  %v411_v46 = vadd.f32 %v410_v44, %v1463_v10  ;;  %v565_v47 = vadd.f32 %v564_v45, %v1468_v12  ;;  %385 = vmatmul.f32.gmra.mxu0 %v243_v39  ;;  %498 = vmatmul.f32.gmra.mxu1 %v243_v39 }
  0xee   : > { %661 = vst [vmem:[%s1472_s23 + $0x50] sm:$0xff] %v452_v43 }
  0xef   : > { %732 = vst [vmem:[%s1472_s23 + $0x288] sm:$0xff] %v411_v46 }
  0xf0   : > { %662 = vst [vmem:[%s1472_s23 + $0x58] sm:$0xff] %v565_v47 }
  0xf1   : > { %614 = vmatmul.f32.gmra.mxu2 %v244_v48  ;;  %638 = vmatmul.f32.gmra.mxu3 %v1410_v56 }
  0xf2   : > { %v341_v49 = vpop.f32.mrf.mxu0  ;;  %v454_v50 = vpop.f32.mrf.mxu1 }
  0xf3   : > { %v342_v51 = vadd.f32 %v341_v49, %v1463_v10  ;;  %v455_v52 = vadd.f32 %v454_v50, %v1465_v11 }
  0xf4   : > { %v413_v53 = vpop.f32.mrf.mxu3  ;;  %v567_v54 = vpop.f32.mrf.mxu2 }
  0xf5   : > { %663 = vst [vmem:[%s1472_s23 + $0x60] sm:$0xff] %v342_v51  ;;  %v414_v55 = vadd.f32 %v413_v53, %v1463_v10  ;;  %v568_v57 = vadd.f32 %v567_v54, %v1468_v12  ;;  %388 = vmatmul.f32.gmra.mxu0 %v244_v48  ;;  %501 = vmatmul.f32.gmra.mxu1 %v244_v48 }
  0xf6   : > { %664 = vst [vmem:[%s1472_s23 + $0x68] sm:$0xff] %v455_v52 }
  0xf7   : > { %735 = vst [vmem:[%s1472_s23 + $0x2a0] sm:$0xff] %v414_v55 }
  0xf8   : > { %665 = vst [vmem:[%s1472_s23 + $0x70] sm:$0xff] %v568_v57 }
  0xf9   : > { %617 = vmatmul.f32.gmra.mxu2 %v245_v59  ;;  %641 = vmatmul.f32.gmra.mxu3 %v1417_v58 }
  0xfa   : > { %v344_v56 = vpop.f32.mrf.mxu0  ;;  %v457_v61 = vpop.f32.mrf.mxu1 }
  0xfb   : > { %v345_v63 = vadd.f32 %v344_v56, %v1463_v10  ;;  %v458_v0 = vadd.f32 %v457_v61, %v1465_v11 }
  0xfc   : > { %v416_v1 = vpop.f32.mrf.mxu3  ;;  %v570_v2 = vpop.f32.mrf.mxu2 }
  0xfd   : > { %666 = vst [vmem:[%s1472_s23 + $0x78] sm:$0xff] %v345_v63  ;;  %v417_v3 = vadd.f32 %v416_v1, %v1463_v10  ;;  %v571_v4 = vadd.f32 %v570_v2, %v1468_v12  ;;  %391 = vmatmul.f32.gmra.mxu0 %v245_v59  ;;  %504 = vmatmul.f32.gmra.mxu1 %v245_v59 }
  0xfe   : > { %667 = vst [vmem:[%s1472_s23 + $0x80] sm:$0xff] %v458_v0 }
  0xff   : > { %738 = vst [vmem:[%s1472_s23 + $0x2b8] sm:$0xff] %v417_v3 }
 0x100   : > { %668 = vst [vmem:[%s1472_s23 + $0x88] sm:$0xff] %v571_v4 }
 0x101   : > { %620 = vmatmul.f32.gmra.mxu2 %v246_v5  ;;  %644 = vmatmul.f32.gmra.mxu3 %v1426_v60 }
 0x102   : > { %v347_v58 = vpop.f32.mrf.mxu0  ;;  %v460_v6 = vpop.f32.mrf.mxu1 }
 0x103   : > { %v348_v7 = vadd.f32 %v347_v58, %v1463_v10  ;;  %v461_v8 = vadd.f32 %v460_v6, %v1465_v11 }
 0x104   : > { %v419_v9 = vpop.f32.mrf.mxu3  ;;  %v573_v13 = vpop.f32.mrf.mxu2 }
 0x105   : > { %669 = vst [vmem:[%s1472_s23 + $0x90] sm:$0xff] %v348_v7  ;;  %v420_v14 = vadd.f32 %v419_v9, %v1463_v10  ;;  %v574_v15 = vadd.f32 %v573_v13, %v1468_v12  ;;  %394 = vmatmul.f32.gmra.mxu0 %v246_v5  ;;  %507 = vmatmul.f32.gmra.mxu1 %v246_v5 }
 0x106   : > { %670 = vst [vmem:[%s1472_s23 + $0x98] sm:$0xff] %v461_v8 }
 0x107   : > { %741 = vst [vmem:[%s1472_s23 + $0x2d0] sm:$0xff] %v420_v14 }
 0x108   : > { %671 = vst [vmem:[%s1472_s23 + $0xa0] sm:$0xff] %v574_v15 }
 0x109   : > { %623 = vmatmul.f32.gmra.mxu2 %v247_v16  ;;  %647 = vmatmul.f32.gmra.mxu3 %v1435_v62 }
 0x10a   : > { %v350_v60 = vpop.f32.mrf.mxu0  ;;  %v463_v17 = vpop.f32.mrf.mxu1 }
 0x10b   : > { %v351_v18 = vadd.f32 %v350_v60, %v1463_v10  ;;  %v464_v19 = vadd.f32 %v463_v17, %v1465_v11 }
 0x10c   : > { %v422_v20 = vpop.f32.mrf.mxu3  ;;  %v576_v21 = vpop.f32.mrf.mxu2 }
 0x10d   : > { %672 = vst [vmem:[%s1472_s23 + $0xa8] sm:$0xff] %v351_v18  ;;  %v423_v22 = vadd.f32 %v422_v20, %v1463_v10  ;;  %v577_v23 = vadd.f32 %v576_v21, %v1468_v12  ;;  %397 = vmatmul.f32.gmra.mxu0 %v247_v16  ;;  %510 = vmatmul.f32.gmra.mxu1 %v247_v16 }
 0x10e   : > { %673 = vst [vmem:[%s1472_s23 + $0xb0] sm:$0xff] %v464_v19 }
 0x10f   : > { %744 = vst [vmem:[%s1472_s23 + $0x2e8] sm:$0xff] %v423_v22 }
 0x110   : > { %674 = vst [vmem:[%s1472_s23 + $0xb8] sm:$0xff] %v577_v23 }
 0x112   : > { %v353_v62 = vpop.f32.mrf.mxu0  ;;  %v466_v24 = vpop.f32.mrf.mxu1 }
 0x113   : > { %v354_v25 = vadd.f32 %v353_v62, %v1463_v10  ;;  %v467_v26 = vadd.f32 %v466_v24, %v1465_v11 }
 0x114   : > { %v514_v27 = vpop.f32.mrf.mxu3  ;;  %v579_v28 = vpop.f32.mrf.mxu2 }
 0x115   : > { %675 = vst [vmem:[%s1472_s23 + $0xc0] sm:$0xff] %v354_v25  ;;  %v515_v29 = vadd.f32 %v514_v27, %v1465_v11  ;;  %v580_v30 = vadd.f32 %v579_v28, %v1468_v12 }
 0x116   : > { %676 = vst [vmem:[%s1472_s23 + $0xc8] sm:$0xff] %v467_v26 }
 0x117   : > { %724 = vst [vmem:[%s1472_s23 + $0x248] sm:$0xff] %v515_v29 }
 0x118   : > { %677 = vst [vmem:[%s1472_s23 + $0xd0] sm:$0xff] %v580_v30 }
 0x11a   : > { %v356_v31 = vpop.f32.mrf.mxu0  ;;  %v469_v32 = vpop.f32.mrf.mxu1 }
 0x11b   : > { %v357_v33 = vadd.f32 %v356_v31, %v1463_v10  ;;  %v470_v34 = vadd.f32 %v469_v32, %v1465_v11 }
 0x11c   : > { %v517_v35 = vpop.f32.mrf.mxu3  ;;  %v582_v36 = vpop.f32.mrf.mxu2 }
 0x11d   : > { %678 = vst [vmem:[%s1472_s23 + $0xd8] sm:$0xff] %v357_v33  ;;  %v518_v37 = vadd.f32 %v517_v35, %v1465_v11  ;;  %v583_v38 = vadd.f32 %v582_v36, %v1468_v12 }
 0x11e   : > { %679 = vst [vmem:[%s1472_s23 + $0xe0] sm:$0xff] %v470_v34 }
 0x11f   : > { %727 = vst [vmem:[%s1472_s23 + $0x260] sm:$0xff] %v518_v37 }
 0x120   : > { %680 = vst [vmem:[%s1472_s23 + $0xe8] sm:$0xff] %v583_v38 }
 0x122   : > { %v359_v39 = vpop.f32.mrf.mxu0  ;;  %v472_v40 = vpop.f32.mrf.mxu1 }
 0x123   : > { %v360_v41 = vadd.f32 %v359_v39, %v1463_v10  ;;  %v473_v42 = vadd.f32 %v472_v40, %v1465_v11 }
 0x124   : > { %v520_v43 = vpop.f32.mrf.mxu3  ;;  %v585_v44 = vpop.f32.mrf.mxu2 }
 0x125   : > { %681 = vst [vmem:[%s1472_s23 + $0xf0] sm:$0xff] %v360_v41  ;;  %v521_v45 = vadd.f32 %v520_v43, %v1465_v11  ;;  %v586_v46 = vadd.f32 %v585_v44, %v1468_v12 }
 0x126   : > { %682 = vst [vmem:[%s1472_s23 + $0xf8] sm:$0xff] %v473_v42 }
 0x127   : > { %730 = vst [vmem:[%s1472_s23 + $0x278] sm:$0xff] %v521_v45 }
 0x128   : > { %683 = vst [vmem:[%s1472_s23 + $0x100] sm:$0xff] %v586_v46 }
 0x12a   : > { %v362_v47 = vpop.f32.mrf.mxu0  ;;  %v475_v48 = vpop.f32.mrf.mxu1 }
 0x12b   : > { %v363_v49 = vadd.f32 %v362_v47, %v1463_v10  ;;  %v476_v50 = vadd.f32 %v475_v48, %v1465_v11 }
 0x12c   : > { %v523_v51 = vpop.f32.mrf.mxu3  ;;  %v588_v52 = vpop.f32.mrf.mxu2 }
 0x12d   : > { %684 = vst [vmem:[%s1472_s23 + $0x108] sm:$0xff] %v363_v49  ;;  %v524_v53 = vadd.f32 %v523_v51, %v1465_v11  ;;  %v589_v54 = vadd.f32 %v588_v52, %v1468_v12 }
 0x12e   : > { %685 = vst [vmem:[%s1472_s23 + $0x110] sm:$0xff] %v476_v50 }
 0x12f   : > { %733 = vst [vmem:[%s1472_s23 + $0x290] sm:$0xff] %v524_v53 }
 0x130   : > { %686 = vst [vmem:[%s1472_s23 + $0x118] sm:$0xff] %v589_v54 }
 0x132   : > { %v365_v55 = vpop.f32.mrf.mxu0  ;;  %v478_v57 = vpop.f32.mrf.mxu1 }
 0x133   : > { %v366_v59 = vadd.f32 %v365_v55, %v1463_v10  ;;  %v479_v56 = vadd.f32 %v478_v57, %v1465_v11 }
 0x134   : > { %v526_v61 = vpop.f32.mrf.mxu3  ;;  %v591_v63 = vpop.f32.mrf.mxu2 }
 0x135   : > { %687 = vst [vmem:[%s1472_s23 + $0x120] sm:$0xff] %v366_v59  ;;  %v527_v0 = vadd.f32 %v526_v61, %v1465_v11  ;;  %v592_v1 = vadd.f32 %v591_v63, %v1468_v12 }
 0x136   : > { %688 = vst [vmem:[%s1472_s23 + $0x128] sm:$0xff] %v479_v56 }
 0x137   : > { %736 = vst [vmem:[%s1472_s23 + $0x2a8] sm:$0xff] %v527_v0 }
 0x138   : > { %689 = vst [vmem:[%s1472_s23 + $0x130] sm:$0xff] %v592_v1 }
 0x13a   : > { %v368_v2 = vpop.f32.mrf.mxu0  ;;  %v481_v3 = vpop.f32.mrf.mxu1 }
 0x13b   : > { %v369_v4 = vadd.f32 %v368_v2, %v1463_v10  ;;  %v482_v5 = vadd.f32 %v481_v3, %v1465_v11 }
 0x13c   : > { %v529_v58 = vpop.f32.mrf.mxu3  ;;  %v594_v6 = vpop.f32.mrf.mxu2 }
 0x13d   : > { %690 = vst [vmem:[%s1472_s23 + $0x138] sm:$0xff] %v369_v4  ;;  %v530_v7 = vadd.f32 %v529_v58, %v1465_v11  ;;  %v595_v8 = vadd.f32 %v594_v6, %v1468_v12 }
 0x13e   : > { %691 = vst [vmem:[%s1472_s23 + $0x140] sm:$0xff] %v482_v5 }
 0x13f   : > { %739 = vst [vmem:[%s1472_s23 + $0x2c0] sm:$0xff] %v530_v7 }
 0x140   : > { %692 = vst [vmem:[%s1472_s23 + $0x148] sm:$0xff] %v595_v8 }
 0x142   : > { %v371_v9 = vpop.f32.mrf.mxu0  ;;  %v484_v13 = vpop.f32.mrf.mxu1 }
 0x143   : > { %v372_v14 = vadd.f32 %v371_v9, %v1463_v10  ;;  %v485_v15 = vadd.f32 %v484_v13, %v1465_v11 }
 0x144   : > { %v532_v16 = vpop.f32.mrf.mxu3  ;;  %v597_v60 = vpop.f32.mrf.mxu2 }
 0x145   : > { %693 = vst [vmem:[%s1472_s23 + $0x150] sm:$0xff] %v372_v14  ;;  %v533_v17 = vadd.f32 %v532_v16, %v1465_v11  ;;  %v598_v18 = vadd.f32 %v597_v60, %v1468_v12 }
 0x146   : > { %694 = vst [vmem:[%s1472_s23 + $0x158] sm:$0xff] %v485_v15 }
 0x147   : > { %742 = vst [vmem:[%s1472_s23 + $0x2d8] sm:$0xff] %v533_v17 }
 0x148   : > { %695 = vst [vmem:[%s1472_s23 + $0x160] sm:$0xff] %v598_v18 }
 0x14a   : > { %v374_v19 = vpop.f32.mrf.mxu0  ;;  %v487_v20 = vpop.f32.mrf.mxu1 }
 0x14b   : > { %v375_v21 = vadd.f32 %v374_v19, %v1463_v10  ;;  %v488_v22 = vadd.f32 %v487_v20, %v1465_v11 }
 0x14c   : > { %v535_v23 = vpop.f32.mrf.mxu3  ;;  %v600_v62 = vpop.f32.mrf.mxu2 }
 0x14d   : > { %696 = vst [vmem:[%s1472_s23 + $0x168] sm:$0xff] %v375_v21  ;;  %v536_v24 = vadd.f32 %v535_v23, %v1465_v11  ;;  %v601_v25 = vadd.f32 %v600_v62, %v1468_v12 }
 0x14e   : > { %697 = vst [vmem:[%s1472_s23 + $0x170] sm:$0xff] %v488_v22 }
 0x14f   : > { %745 = vst [vmem:[%s1472_s23 + $0x2f0] sm:$0xff] %v536_v24 }
 0x150   : > { %698 = vst [vmem:[%s1472_s23 + $0x178] sm:$0xff] %v601_v25 }
 0x152   : > { %v377_v26 = vpop.f32.mrf.mxu0  ;;  %v490_v27 = vpop.f32.mrf.mxu1 }
 0x153   : > { %v378_v28 = vadd.f32 %v377_v26, %v1463_v10  ;;  %v491_v29 = vadd.f32 %v490_v27, %v1465_v11 }
 0x154   : > { %v603_v30 = vpop.f32.mrf.mxu2  ;;  %v627_v31 = vpop.f32.mrf.mxu3 }
 0x155   : > { %699 = vst [vmem:[%s1472_s23 + $0x180] sm:$0xff] %v378_v28  ;;  %v604_v32 = vadd.f32 %v603_v30, %v1468_v12  ;;  %v628_v33 = vadd.f32 %v627_v31, %v1468_v12 }
 0x156   : > { %700 = vst [vmem:[%s1472_s23 + $0x188] sm:$0xff] %v491_v29 }
 0x157   : > { %701 = vst [vmem:[%s1472_s23 + $0x190] sm:$0xff] %v604_v32 }
 0x158   : > { %725 = vst [vmem:[%s1472_s23 + $0x250] sm:$0xff] %v628_v33 }
 0x15a   : > { %v380_v34 = vpop.f32.mrf.mxu0  ;;  %v493_v35 = vpop.f32.mrf.mxu1 }
 0x15b   : > { %v381_v36 = vadd.f32 %v380_v34, %v1463_v10  ;;  %v494_v37 = vadd.f32 %v493_v35, %v1465_v11 }
 0x15c   : > { %v606_v38 = vpop.f32.mrf.mxu2  ;;  %v630_v39 = vpop.f32.mrf.mxu3 }
 0x15d   : > { %702 = vst [vmem:[%s1472_s23 + $0x198] sm:$0xff] %v381_v36  ;;  %v607_v40 = vadd.f32 %v606_v38, %v1468_v12  ;;  %v631_v41 = vadd.f32 %v630_v39, %v1468_v12 }
 0x15e   : > { %703 = vst [vmem:[%s1472_s23 + $0x1a0] sm:$0xff] %v494_v37 }
 0x15f   : > { %704 = vst [vmem:[%s1472_s23 + $0x1a8] sm:$0xff] %v607_v40 }
 0x160   : > { %728 = vst [vmem:[%s1472_s23 + $0x268] sm:$0xff] %v631_v41 }
 0x162   : > { %v383_v42 = vpop.f32.mrf.mxu0  ;;  %v496_v43 = vpop.f32.mrf.mxu1 }
 0x163   : > { %v384_v44 = vadd.f32 %v383_v42, %v1463_v10  ;;  %v497_v45 = vadd.f32 %v496_v43, %v1465_v11 }
 0x164   : > { %v609_v46 = vpop.f32.mrf.mxu2  ;;  %v633_v47 = vpop.f32.mrf.mxu3 }
 0x165   : > { %705 = vst [vmem:[%s1472_s23 + $0x1b0] sm:$0xff] %v384_v44  ;;  %v610_v48 = vadd.f32 %v609_v46, %v1468_v12  ;;  %v634_v49 = vadd.f32 %v633_v47, %v1468_v12 }
 0x166   : > { %706 = vst [vmem:[%s1472_s23 + $0x1b8] sm:$0xff] %v497_v45 }
 0x167   : > { %707 = vst [vmem:[%s1472_s23 + $0x1c0] sm:$0xff] %v610_v48 }
 0x168   : > { %731 = vst [vmem:[%s1472_s23 + $0x280] sm:$0xff] %v634_v49 }
 0x16a   : > { %v386_v50 = vpop.f32.mrf.mxu0  ;;  %v499_v51 = vpop.f32.mrf.mxu1 }
 0x16b   : > { %v387_v52 = vadd.f32 %v386_v50, %v1463_v10  ;;  %v500_v53 = vadd.f32 %v499_v51, %v1465_v11 }
 0x16c   : > { %v612_v54 = vpop.f32.mrf.mxu2  ;;  %v636_v55 = vpop.f32.mrf.mxu3 }
 0x16d   : > { %708 = vst [vmem:[%s1472_s23 + $0x1c8] sm:$0xff] %v387_v52  ;;  %v613_v57 = vadd.f32 %v612_v54, %v1468_v12  ;;  %v637_v59 = vadd.f32 %v636_v55, %v1468_v12 }
 0x16e   : > { %709 = vst [vmem:[%s1472_s23 + $0x1d0] sm:$0xff] %v500_v53 }
 0x16f   : > { %710 = vst [vmem:[%s1472_s23 + $0x1d8] sm:$0xff] %v613_v57 }
 0x170   : > { %734 = vst [vmem:[%s1472_s23 + $0x298] sm:$0xff] %v637_v59 }
 0x172   : > { %v389_v56 = vpop.f32.mrf.mxu0  ;;  %v502_v61 = vpop.f32.mrf.mxu1 }
 0x173   : > { %v390_v63 = vadd.f32 %v389_v56, %v1463_v10  ;;  %v503_v0 = vadd.f32 %v502_v61, %v1465_v11 }
 0x174   : > { %v615_v1 = vpop.f32.mrf.mxu2  ;;  %v639_v2 = vpop.f32.mrf.mxu3 }
 0x175   : > { %711 = vst [vmem:[%s1472_s23 + $0x1e0] sm:$0xff] %v390_v63  ;;  %v616_v3 = vadd.f32 %v615_v1, %v1468_v12  ;;  %v640_v4 = vadd.f32 %v639_v2, %v1468_v12 }
 0x176   : > { %712 = vst [vmem:[%s1472_s23 + $0x1e8] sm:$0xff] %v503_v0 }
 0x177   : > { %713 = vst [vmem:[%s1472_s23 + $0x1f0] sm:$0xff] %v616_v3 }
 0x178   : > { %737 = vst [vmem:[%s1472_s23 + $0x2b0] sm:$0xff] %v640_v4 }
 0x17a   : > { %v392_v5 = vpop.f32.mrf.mxu0  ;;  %v505_v58 = vpop.f32.mrf.mxu1 }
 0x17b   : > { %v393_v6 = vadd.f32 %v392_v5, %v1463_v10  ;;  %v506_v7 = vadd.f32 %v505_v58, %v1465_v11 }
 0x17c   : > { %v618_v8 = vpop.f32.mrf.mxu2  ;;  %v642_v9 = vpop.f32.mrf.mxu3 }
 0x17d   : > { %714 = vst [vmem:[%s1472_s23 + $0x1f8] sm:$0xff] %v393_v6  ;;  %v619_v13 = vadd.f32 %v618_v8, %v1468_v12  ;;  %v643_v14 = vadd.f32 %v642_v9, %v1468_v12 }
 0x17e   : > { %715 = vst [vmem:[%s1472_s23 + $0x200] sm:$0xff] %v506_v7 }
 0x17f   : > { %716 = vst [vmem:[%s1472_s23 + $0x208] sm:$0xff] %v619_v13 }
 0x180   : > { %740 = vst [vmem:[%s1472_s23 + $0x2c8] sm:$0xff] %v643_v14 }
 0x182   : > { %v395_v15 = vpop.f32.mrf.mxu0  ;;  %v508_v16 = vpop.f32.mrf.mxu1 }
 0x183   : > { %v396_v60 = vadd.f32 %v395_v15, %v1463_v10  ;;  %v509_v17 = vadd.f32 %v508_v16, %v1465_v11 }
 0x184   : > { %v621_v18 = vpop.f32.mrf.mxu2  ;;  %v645_v19 = vpop.f32.mrf.mxu3 }
 0x185   : > { %717 = vst [vmem:[%s1472_s23 + $0x210] sm:$0xff] %v396_v60  ;;  %v622_v20 = vadd.f32 %v621_v18, %v1468_v12  ;;  %v646_v21 = vadd.f32 %v645_v19, %v1468_v12 }
 0x186   : > { %718 = vst [vmem:[%s1472_s23 + $0x218] sm:$0xff] %v509_v17 }
 0x187   : > { %719 = vst [vmem:[%s1472_s23 + $0x220] sm:$0xff] %v622_v20 }
 0x188   : > { %743 = vst [vmem:[%s1472_s23 + $0x2e0] sm:$0xff] %v646_v21 }
 0x18a   : > { %v398_v22 = vpop.f32.mrf.mxu0  ;;  %v511_v23 = vpop.f32.mrf.mxu1 }
 0x18b   : > { %v399_v62 = vadd.f32 %v398_v22, %v1463_v10  ;;  %v512_v24 = vadd.f32 %v511_v23, %v1465_v11 }
 0x18c   : > { %v624_v25 = vpop.f32.mrf.mxu2  ;;  %v648_v26 = vpop.f32.mrf.mxu3 }
 0x18d   : > { %720 = vst [vmem:[%s1472_s23 + $0x228] sm:$0xff] %v399_v62  ;;  %v625_v27 = vadd.f32 %v624_v25, %v1468_v12  ;;  %v649_v28 = vadd.f32 %v648_v26, %v1468_v12 }
 0x18e   : > { %721 = vst [vmem:[%s1472_s23 + $0x230] sm:$0xff] %v512_v24 }
 0x18f   : > { %722 = vst [vmem:[%s1472_s23 + $0x238] sm:$0xff] %v625_v27 }
 0x190   : > { %746 = vst [vmem:[%s1472_s23 + $0x2f8] sm:$0xff] %v649_v28 }
 0x191   : > { %1114 = shalt.err (!%p1111_p10)
}
 0x192   : > { %s1165_s22 = smov 384   ;;  %s1166_s25 = smov 24  }
 0x193   : > { %934 = dma.vmem_to_hbm [thread:$0]  (%p1253_p3), %s762_s16, 12288, %s764_s4, %s748_s5, %s1165_s22, %s1165_s22, %s1166_s25  }
 0x194 PF: > { %s778_s30 = sand.u32 1, %s1145_s12   ;;  %p1721_p12 = scmp.ge.s32.totalorder %s1157_s15, 2 }
 0x195   : > { %s779_s18 = scalar_lea.sflag [#allocation4], %s778_s30 }
 0x196   : > { %p948_p13 = pnand %p1721_p12, %p1222_p6 }
 0x198   : > { %p949_p0 = pneg %p948_p13 }
 0x19a   : > { %1140 = dma.done.wait (%p949_p0), %s779_s18, 12288  }
 0x19b   : > { %1142 = vsyncadd (%p949_p0), %s779_s18, 4294955008  ;;  %p17_p5 = scmp.ge.s32.totalorder %s1243_s6, 4   ;;  %s1722_s12 = smov %s1149_s13 }
 0x19c   : > { %s1723_s13 = smov %s1153_s14  ;;  %s1724_s14 = smov %s1259_s10 }
 0x19d   : > { %s1725_s15 = smov %s1243_s6  ;;  %19 = sbr.rel (!%p17_p5) target bundleno = 6 (0x6), region = 85 }
 0x1a2   :  { %785 = vsyncpa [#allocation3], 1 }
 0x1a3   :  { %787 = vsyncpa [#allocation3 + $0x1], 1 }
 0x1a4   :  { %788 = vsyncpa [#allocation6], 1 }
 0x1a5   :  { %789 = vsyncpa [#allocation4], 1 }
 0x1a6   :  { %791 = vsyncpa [#allocation4 + $0x1], 1 }

</bundles_post_ra>
